<compile_context>
chip_gen: v5e
topology: v5e:2x2
jax: 0.10.0
libtpu: 0.0.40
codegen_flags: <defaults>
</compile_context>

<pallas_src>
import jax
import jax.numpy as jnp
from jax.experimental import pallas as pl
from jax.experimental.pallas import tpu as pltpu


_F_OUT = 34  # output features: [x2(16) | x3(1) | x2(16) | x3(1)]


def _affine_kernel(x1_ref, a_ref, c_ref, out_ref):
    """out = x1 * A + C for one batch tile.

    x1_ref  : (TB, 1)       input rows
    a_ref   : (1, 34)       folded per-column scale
    c_ref   : (1, 34)       folded per-column offset
    out_ref : (TB, 34)      output == [x2 | x3 | x2 | x3]
    """
    out_ref[...] = x1_ref[...] * a_ref[...] + c_ref[...]


def _fold_params(w1, b1, w2, b2):
    """Fold Linear(1,16) -> Linear(16,1) -> cat -> slice -> cat into one affine.

    x2 = x1 * w1^T + b1
    x3 = x1 * (w2 . w1) + (w2 . b1 + b2)      (reassociated dot; ~1e-6 fp diff)
    out = x1 * A + C, A/C shaped (1, 34) = [col16 | col1 | col16 | col1].
    """
    w1t = w1.reshape(1, 16).astype(jnp.float32)   # torch W1 is (16, 1)
    b1r = b1.reshape(1, 16).astype(jnp.float32)
    w2r = w2.reshape(1, 16).astype(jnp.float32)
    b2s = b2.reshape(1, 1).astype(jnp.float32)

    a3 = jnp.sum(w2r * w1t, axis=1, keepdims=True)          # (1, 1)
    c3 = jnp.sum(w2r * b1r, axis=1, keepdims=True) + b2s     # (1, 1)

    A = jnp.concatenate([w1t, a3, w1t, a3], axis=1)          # (1, 34)
    C = jnp.concatenate([b1r, c3, b1r, c3], axis=1)          # (1, 34)
    return A, C


def model_forward(x1, w1, b1, w2, b2, *, tb=8192, min_pallas_batch=2048):
    """x1: (B, 1) f32.  w1: (16, 1), b1: (16,), w2: (1, 16), b2: (1,)."""
    B = x1.shape[0]
    x1 = x1.astype(jnp.float32)
    A, C = _fold_params(w1, b1, w2, b2)

    # Small-batch fast path: a one-step Pallas launch is pure fixed overhead;
    # let XLA fuse the tiny elementwise graph instead.
    if B < min_pallas_batch:
        return x1 * A + C

    # Batch tiling: TB multiple of 8, bounded by the lane-padded VMEM budget
    # (~2 KiB/row double-buffered, cap 16384 rows ~= 33 MiB), and clamped so
    # the "parallel" grid has >= 2 steps (feeds both TensorCores on v7x).
    if B <= 16:
        TB = B                      # single full-extent block (always legal)
    else:
        TB = min(int(tb), B, 16384)
        half = ((pl.cdiv(B, 2) + 7) // 8) * 8
        TB = min(TB, half)
        TB = max(8, (TB // 8) * 8)
    grid = (pl.cdiv(B, TB),)

    # Both the x1 tile and the out tile are lane-padded to 128 lanes in VMEM.
    per_buf = TB * 128 * 4
    vmem_limit = min(max(2 * 2 * per_buf + (4 << 20), 16 << 20), 48 << 20)

    # Mem-bound cost model: 4 B read + 136 B written per row, tiny params.
    cost = pl.CostEstimate(
        flops=2 * _F_OUT * B,
        transcendentals=0,
        bytes_accessed=B * (4 + _F_OUT * 4) + 2 * _F_OUT * 4,
    )

    return pl.pallas_call(
        _affine_kernel,
        out_shape=jax.ShapeDtypeStruct((B, _F_OUT), jnp.float32),
        grid=grid,
        in_specs=[
            pl.BlockSpec((TB, 1), lambda i: (i, 0)),        # x1 tile
            pl.BlockSpec((1, _F_OUT), lambda i: (0, 0)),    # A (resident)
            pl.BlockSpec((1, _F_OUT), lambda i: (0, 0)),    # C (resident)
        ],
        out_specs=pl.BlockSpec((TB, _F_OUT), lambda i: (i, 0)),
        compiler_params=pltpu.CompilerParams(
            dimension_semantics=("parallel",),
            vmem_limit_bytes=vmem_limit,
        ),
        cost_estimate=cost,
    )(x1, A, C)


def model_forward_ref(x1, w1, b1, w2, b2):
    """Pure-JAX reference mirroring the PyTorch forward exactly (two-step)."""
    x2 = x1 @ w1.T + b1                        # (B, 16)
    x3 = x2 @ w2.T + b2                        # (B, 1)
    x4 = jnp.concatenate([x2, x3], axis=1)     # (B, 17)
    x5 = x4[:, 0:]                             # identity slice (0:INT64_MAX)
    x6 = x5[:, 0:]                             # identity slice
    x7 = jnp.concatenate([x4, x6], axis=1)     # (B, 34)
    return x7


if __name__ == "__main__":
    key = jax.random.PRNGKey(0)
    k_x, k_w1, k_b1, k_w2, k_b2, k_x2, k_x3 = jax.random.split(key, 7)

    # Parameters (shapes match torch.nn.Linear(1,16) / Linear(16,1)).
    w1 = jax.random.normal(k_w1, (16, 1), dtype=jnp.float32) * 0.5
    b1 = jax.random.normal(k_b1, (16,), dtype=jnp.float32) * 0.1
    w2 = jax.random.normal(k_w2, (1, 16), dtype=jnp.float32) * 0.5
    b2 = jax.random.normal(k_b2, (1,), dtype=jnp.float32) * 0.1

    # 1) Tiny batch like the torch example -> small-batch fast path.
    B = 2
    x1 = jax.random.normal(k_x, (B, 1), dtype=jnp.float32)
    out = jax.block_until_ready(model_forward(x1, w1, b1, w2, b2))
    ref = model_forward_ref(x1, w1, b1, w2, b2)
    assert out.shape == (B, 34), out.shape
    assert jnp.allclose(out, ref, atol=1e-5, rtol=1e-5), (out, ref)

    # 2) Same tiny batch forced through the Pallas kernel (single full block).
    out_k = jax.block_until_ready(
        model_forward(x1, w1, b1, w2, b2, min_pallas_batch=0))
    assert jnp.allclose(out_k, ref, atol=1e-5, rtol=1e-5), (out_k, ref)

    # 3) Multi-tile ragged grid path through the Pallas kernel.
    B2 = 40
    x1b = jax.random.normal(k_x2, (B2, 1), dtype=jnp.float32)
    out2 = jax.block_until_ready(
        model_forward(x1b, w1, b1, w2, b2, tb=16, min_pallas_batch=0))
    ref2 = model_forward_ref(x1b, w1, b1, w2, b2)
    assert out2.shape == (B2, 34), out2.shape
    assert jnp.allclose(out2, ref2, atol=1e-5, rtol=1e-5), (out2, ref2)

    # 4) Default path (larger batch): exercises the >=2-step grid clamp.
    B3 = 4096
    x1c = jax.random.normal(k_x3, (B3, 1), dtype=jnp.float32)
    out3 = jax.block_until_ready(model_forward(x1c, w1, b1, w2, b2))
    ref3 = model_forward_ref(x1c, w1, b1, w2, b2)
    assert out3.shape == (B3, 34), out3.shape
    assert jnp.allclose(out3, ref3, atol=1e-5, rtol=1e-5)

    print("KERNEL_OK")
</pallas_src>

<mosaic_0001>
module attributes {stable_mosaic.version = 11 : i64} {
  func.func @_affine_kernel(%arg0: i32, %arg1: memref<2x1xf32, #tpu.memory_space<vmem>>, %arg2: memref<1x34xf32, #tpu.memory_space<vmem>>, %arg3: memref<1x34xf32, #tpu.memory_space<vmem>>, %arg4: memref<2x34xf32, #tpu.memory_space<vmem>>) attributes {dimension_semantics = [#tpu.dimension_semantics<parallel>], iteration_bounds = array<i64: 1>, scalar_prefetch = 0 : i64, scratch_operands = 0 : i64, tpu.core_type = #tpu.core_type<tc>, window_params = [{transform_indices = @transform_0, window_bounds = array<i64: 2, 1>}, {pipeline_mode = #tpu.pipeline_mode<synchronous>, transform_indices = @transform_1, window_bounds = array<i64: 1, 34>}, {pipeline_mode = #tpu.pipeline_mode<synchronous>, transform_indices = @transform_2, window_bounds = array<i64: 1, 34>}, {transform_indices = @transform_3, window_bounds = array<i64: 2, 34>}]} {
    %c0 = arith.constant 0 : index
    %c0_0 = arith.constant 0 : index
    %0 = vector.load %arg1[%c0, %c0_0] : memref<2x1xf32, #tpu.memory_space<vmem>>, vector<2x1xf32>
    %c0_1 = arith.constant 0 : index
    %c0_2 = arith.constant 0 : index
    %1 = vector.load %arg2[%c0_1, %c0_2] : memref<1x34xf32, #tpu.memory_space<vmem>>, vector<1x34xf32>
    %2 = vector.broadcast %0 : vector<2x1xf32> to vector<2x34xf32>
    %3 = vector.broadcast %1 : vector<1x34xf32> to vector<2x34xf32>
    %4 = arith.mulf %2, %3 : vector<2x34xf32>
    %c0_3 = arith.constant 0 : index
    %c0_4 = arith.constant 0 : index
    %5 = vector.load %arg3[%c0_3, %c0_4] : memref<1x34xf32, #tpu.memory_space<vmem>>, vector<1x34xf32>
    %6 = vector.broadcast %5 : vector<1x34xf32> to vector<2x34xf32>
    %7 = arith.addf %4, %6 : vector<2x34xf32>
    %c0_5 = arith.constant 0 : index
    %c0_6 = arith.constant 0 : index
    %8 = vector.load %arg4[%c0_5, %c0_6] : memref<2x34xf32, #tpu.memory_space<vmem>>, vector<2x34xf32>
    tpu.vector_store %arg4[%c0_5, %c0_6], %7 {strides = array<i32>} : memref<2x34xf32, #tpu.memory_space<vmem>>, vector<2x34xf32>,
    return
  }
  func.func @transform_0(%arg0: i32) -> (i32, i32) {
    %c0_i32 = arith.constant 0 : i32
    %c0_i32_0 = arith.constant 0 : i32
    return %arg0, %c0_i32 : i32, i32
  }
  func.func @transform_1(%arg0: i32) -> (i32, i32) {
    %c0_i32 = arith.constant 0 : i32
    %c0_i32_0 = arith.constant 0 : i32
    %c0_i32_1 = arith.constant 0 : i32
    return %c0_i32, %c0_i32_0 : i32, i32
  }
  func.func @transform_2(%arg0: i32) -> (i32, i32) {
    %c0_i32 = arith.constant 0 : i32
    %c0_i32_0 = arith.constant 0 : i32
    %c0_i32_1 = arith.constant 0 : i32
    return %c0_i32, %c0_i32_0 : i32, i32
  }
  func.func @transform_3(%arg0: i32) -> (i32, i32) {
    %c0_i32 = arith.constant 0 : i32
    %c0_i32_0 = arith.constant 0 : i32
    return %arg0, %c0_i32 : i32, i32
  }
}

</mosaic_0001>

<bundles_post_ra>
// kernel: tpu_custom_call.1
= control target key start
LH: loop header
LB: loop body
LE: loop exit
PB: predicated region body
PF: predicated region fallthrough
CT: control target
= control target key end

     0   :  { %v80_v1 = vmov 0   ;;  %s114_s0 = inlined_call_operand.vmem [shape: f32[2,1], index: 0, kind: input, shape index: {}]   ;;  %s115_s1 = inlined_call_operand.vmem [shape: f32[1,34], index: 1, kind: input, shape index: {}]   ;;  %s116_s2 = inlined_call_operand.vmem [shape: f32[1,34], index: 2, kind: input, shape index: {}]   ;;  %s117_s3 = inlined_call_operand.hbm [shape: f32[2,34], index: 3, kind: output, shape index: {}]  }
   0x1   :  { %v15_v0 = vld [vmem:[%s114_s0] sm:$0x3]  ;;  %51 = vset.pattern.permute.xlu0 %v80_v1 }
   0x2   :  { %19 = vperm.xlu0 %51, %v15_v0  }
   0x3   :  { %8 = vsyncpa [#allocation3], 0  ;;  %v52_v2 = vld [vmem:[%s115_s1] ss:$0 sm:$0xff]  ;;  %s81_s18 = smov [#allocation2]   ;;  %s40_s22 = sshll.u32 %s117_s3, 4  ;;  %s41_s22 = int_to_ptr.hbm [resolvable:$true] %s40_s22 }
   0x4   :  { %v53_v3 = vld [vmem:[%s116_s2] ss:$0 sm:$0xff]  ;;  %s38_s19 = sshll.u32 %s81_s18, 4  ;;  %vm31_vm0 = vcmask 271360   ;;  %s39_s19 = int_to_ptr.vmem [resolvable:$true] %s38_s19 }
  0x74   :  { %v20_v4 = vpop.permute.xlu0 %19 }
  0x75   :  { %v25_v5 = vmul.f32 %v52_v2, %v20_v4 }
  0x77   :  { %v30_v6 = vadd.f32 %v53_v3, %v25_v5 }
  0x79   :  { %32 = vst.msk [vmem:[#allocation2] sm:$0x3] %vm31_vm0, %v30_v6 }
  0x7a   :  { %43 = dma.vmem_to_hbm [thread:$0]  %s39_s19, 32, %s41_s22, [#allocation3]  }
  0x7b   :  { %78 = dma.done.wait [#allocation3], 32  }
  0x7c   :  { %79 = vsyncadd [#allocation3], 4294967264 }
  0x7d   :  { %48 = vsyncpa [#allocation3], 1 }

</bundles_post_ra>
